<compile_context>
chip_gen: v7x
topology: tpu7x:2x2x1
jax: 0.10.0
libtpu: 0.0.40
codegen_flags: <defaults>
</compile_context>

<pallas_src>
import functools
import math

import jax
import jax.numpy as jnp
from jax import lax
from jax.experimental import pallas as pl
from jax.experimental.pallas import tpu as pltpu

_MIB = 1024 * 1024
NEG_FILL = -1e9  # matches torch masked_fill_(attn_mask, -1e9)


# ----------------------------------------------------------------------------
# Kernel
# ----------------------------------------------------------------------------
def _attend(q_ref, k_ref, v_ref, mask_ref, ctx_ref, attn_ref, *, scale):
    """One (bh, q-tile) step: scores -> mask -> softmax -> context."""
    q = q_ref[0]  # (tq, dk)   input dtype
    k = k_ref[0]  # (Skv, dk)
    v = v_ref[0]  # (Skv, dv)

    # f32 inputs: HIGHEST precision (true f32 matmul, like torch.matmul).
    # bf16 inputs: DEFAULT -> MXU-native bf16 with f32 accumulation.
    prec = (lax.Precision.HIGHEST if q.dtype == jnp.float32
            else lax.Precision.DEFAULT)

    # scores = (Q @ K^T) / sqrt(dk); contraction on MXU, scale in f32.
    s = lax.dot_general(q, k, (((1,), (1,)), ((), ())),
                        preferred_element_type=jnp.float32,
                        precision=prec)                       # (tq, Skv) f32
    s = s * jnp.float32(scale)

    if mask_ref is not None:
        # masked_fill_(mask, -1e9) as pure VPU arithmetic (mask is {0,1} bf16):
        #   m == 0 -> s exactly;  m == 1 -> -1e9 exactly.
        mf = mask_ref[0].astype(jnp.float32)
        s = s * (1.0 - mf) + jnp.float32(NEG_FILL) * mf

    # Numerically-stable softmax in f32. Exact normalization (attn is a
    # returned output of the module, so no approximate reciprocal here).
    m = jnp.max(s, axis=-1, keepdims=True)
    e = jnp.exp(s - m)
    denom = jnp.sum(e, axis=-1, keepdims=True)
    p = e / denom                                             # (tq, Skv) f32

    # Single low-precision cast reused for the attn store AND the P @ V matmul.
    p_lo = p.astype(attn_ref.dtype)
    attn_ref[0] = p_lo                                        # lane-dense store

    # TODO(synk): training-mode dropout on attn is not implemented (eval identity).
    ctx = jnp.dot(p_lo, v, preferred_element_type=jnp.float32, precision=prec)
    ctx_ref[0] = ctx.astype(ctx_ref.dtype)


def _sdpa_kernel(q_ref, k_ref, v_ref, ctx_ref, attn_ref, *, scale):
    _attend(q_ref, k_ref, v_ref, None, ctx_ref, attn_ref, scale=scale)


def _sdpa_masked_kernel(mask_ref, q_ref, k_ref, v_ref, ctx_ref, attn_ref, *, scale):
    _attend(q_ref, k_ref, v_ref, mask_ref, ctx_ref, attn_ref, scale=scale)


# ----------------------------------------------------------------------------
# VMEM-aware tiling
# ----------------------------------------------------------------------------
def _vmem_capacity_bytes():
    try:
        return int(pltpu.get_tpu_info().vmem_capacity_bytes)
    except Exception:
        return 64 * _MIB  # conservative: v7x per-TensorCore physical VMEM


def _step_vmem_bytes(tq, skv, dk, dv, itemsize, mask_itemsize):
    # Double-buffered streamed blocks (q, k, v, ctx, attn [, mask]) ...
    streamed = (tq * dk + skv * dk + skv * dv + tq * dv + tq * skv) * itemsize
    streamed += tq * skv * mask_itemsize
    # ... plus ~3 live (tq, Skv) f32 intermediates (s, e, p) + slack.
    live = 4 * tq * skv * 4
    return 2 * streamed + live


def _choose_q_tile(sq, skv, dk, dv, itemsize, mask_itemsize, budget):
    # 256-row tiles align with the 2x256^2 MXU (v6e/v7x) and are multiples of
    # 128 (v5e MXU); step down when (tq, Skv) blocks would blow the VMEM budget.
    candidates = [t for t in (256, 128, 64, 32, 16, 8) if sq % t == 0]
    if not candidates:
        candidates = [sq]  # full-extent block (legal for any Sq)
    for tq in candidates:
        if _step_vmem_bytes(tq, skv, dk, dv, itemsize, mask_itemsize) <= budget:
            return tq
    return candidates[-1]


# ----------------------------------------------------------------------------
# Wrapper
# ----------------------------------------------------------------------------
def scaled_dot_product_attention(Q, K, V, attn_mask=None, dropout=None):
    """Forward of ScaledDotProductAttention.

    Q: [B, H, Sq, dk], K: [B, H, Skv, dk], V: [B, H, Skv, dv]
    attn_mask: optional bool/int, broadcastable to [B, H, Sq, Skv];
               True/nonzero => fill score with -1e9.
    Returns (context [B, H, Sq, dv], attn [B, H, Sq, Skv]).
    """
    del dropout  # TODO(synk): dropout module not supported (eval-mode identity).
    B, H, Sq, dk = Q.shape
    Skv = K.shape[2]
    dv = V.shape[3]
    BH = B * H
    scale = 1.0 / math.sqrt(dk)
    itemsize = jnp.dtype(Q.dtype).itemsize
    has_mask = attn_mask is not None
    mask_itemsize = 2 if has_mask else 0  # bf16 {0,1} mask stream

    cap = _vmem_capacity_bytes()
    tq = _choose_q_tile(Sq, Skv, dk, dv, itemsize, mask_itemsize,
                        budget=int(cap * 0.7))
    n_q = Sq // tq

    # Leading-dim reshapes (B, H) -> (B*H) are free: no transpose, no HBM pass.
    q = Q.reshape(BH, Sq, dk)
    k = K.reshape(BH, Skv, dk)
    v = V.reshape(BH, Skv, dv)

    grid = (BH, n_q)
    q_spec = pl.BlockSpec((1, tq, dk), lambda bh, qi: (bh, qi, 0))
    # K/V index maps invariant in qi (innermost axis) => fetched once per (b, h).
    k_spec = pl.BlockSpec((1, Skv, dk), lambda bh, qi: (bh, 0, 0))
    v_spec = pl.BlockSpec((1, Skv, dv), lambda bh, qi: (bh, 0, 0))
    ctx_spec = pl.BlockSpec((1, tq, dv), lambda bh, qi: (bh, qi, 0))
    attn_spec = pl.BlockSpec((1, tq, Skv), lambda bh, qi: (bh, qi, 0))

    out_shape = [
        jax.ShapeDtypeStruct((BH, Sq, dv), Q.dtype),
        jax.ShapeDtypeStruct((BH, Sq, Skv), Q.dtype),
    ]

    step_bytes = _step_vmem_bytes(tq, Skv, dk, dv, itemsize, mask_itemsize)
    vmem_limit = int(min(cap, max(4 * step_bytes, 32 * _MIB)))
    cparams = pltpu.CompilerParams(
        dimension_semantics=("parallel", "parallel"),
        vmem_limit_bytes=vmem_limit)

    flops = 2 * BH * Sq * Skv * (dk + dv)
    bytes_accessed = ((BH * Sq * dk + BH * Skv * dk + BH * Skv * dv
                       + BH * Sq * dv + BH * Sq * Skv) * itemsize
                      + BH * Sq * Skv * mask_itemsize)
    cost = pl.CostEstimate(flops=flops, transcendentals=BH * Sq * Skv,
                           bytes_accessed=bytes_accessed)

    # TODO(synk): kv-tiled / flash-style (no-attn-output) path for very long Skv
    # is not implemented; the module's second return value requires the full attn
    # matrix, so this kernel materializes it.
    if not has_mask:
        ctx, attn = pl.pallas_call(
            functools.partial(_sdpa_kernel, scale=scale),
            grid=grid,
            in_specs=[q_spec, k_spec, v_spec],
            out_specs=[ctx_spec, attn_spec],
            out_shape=out_shape,
            compiler_params=cparams,
            cost_estimate=cost,
        )(q, k, v)
    else:
        m = jnp.asarray(attn_mask)
        while m.ndim < 4:                      # left-pad to 4D
            m = m[None]
        if m.shape[2:] != (Sq, Skv):
            m = jnp.broadcast_to(m, m.shape[:2] + (Sq, Skv))
        m01 = (m != 0).astype(jnp.bfloat16)    # clean {0,1}, 2 B/elem
        mb, mh = m01.shape[0], m01.shape[1]
        if mb == 1 and mh == 1:
            # Broadcast B/H handled by the index_map (bh -> 0): no B*H-sized
            # mask materialization in HBM.
            mask3 = m01.reshape(1, Sq, Skv)
            mask_spec = pl.BlockSpec((1, tq, Skv), lambda bh, qi: (0, qi, 0))
        else:
            if (mb, mh) != (B, H):
                m01 = jnp.broadcast_to(m01, (B, H, Sq, Skv))
            mask3 = m01.reshape(BH, Sq, Skv)
            mask_spec = pl.BlockSpec((1, tq, Skv), lambda bh, qi: (bh, qi, 0))
        ctx, attn = pl.pallas_call(
            functools.partial(_sdpa_masked_kernel, scale=scale),
            grid=grid,
            in_specs=[mask_spec, q_spec, k_spec, v_spec],
            out_specs=[ctx_spec, attn_spec],
            out_shape=out_shape,
            compiler_params=cparams,
            cost_estimate=cost,
        )(mask3, q, k, v)

    return ctx.reshape(B, H, Sq, dv), attn.reshape(B, H, Sq, Skv)


# ----------------------------------------------------------------------------
# Pure-JAX reference (mirrors the PyTorch forward, eval-mode dropout)
# ----------------------------------------------------------------------------
def _sdpa_ref(Q, K, V, attn_mask=None):
    dk = Q.shape[-1]
    Qf = Q.astype(jnp.float32)
    Kf = K.astype(jnp.float32)
    Vf = V.astype(jnp.float32)
    scores = jnp.einsum("bhqd,bhkd->bhqk", Qf, Kf,
                        precision=lax.Precision.HIGHEST) / math.sqrt(dk)
    if attn_mask is not None:
        scores = jnp.where(attn_mask, jnp.float32(NEG_FILL), scores)
    attn = jax.nn.softmax(scores, axis=-1)
    ctx = jnp.einsum("bhqk,bhkd->bhqd", attn, Vf,
                     precision=lax.Precision.HIGHEST)
    return ctx, attn


# ----------------------------------------------------------------------------
if __name__ == "__main__":
    key = jax.random.PRNGKey(0)
    kq, kk, kv = jax.random.split(key, 3)

    # Small shapes consistent with the module (d_model=32, n_heads=4 -> d_k=8).
    B, H, S, dk = 2, 4, 8, 8
    Q = jax.random.normal(kq, (B, H, S, dk), jnp.float32)
    K = jax.random.normal(kk, (B, H, S, dk), jnp.float32)
    V = jax.random.normal(kv, (B, H, S, dk), jnp.float32)

    sdpa = jax.jit(scaled_dot_product_attention)

    # 1) No mask.
    ctx, attn = sdpa(Q, K, V)
    jax.block_until_ready((ctx, attn))
    rctx, rattn = _sdpa_ref(Q, K, V)
    assert ctx.shape == (B, H, S, dk) and attn.shape == (B, H, S, S)
    assert jnp.allclose(ctx, rctx, atol=2e-3, rtol=2e-3)
    assert jnp.allclose(attn, rattn, atol=2e-3, rtol=2e-3)

    # 2) Causal mask (True = masked), full [B, H, S, S], as in decoder self-attn.
    causal = jnp.triu(jnp.ones((S, S), jnp.bool_), k=1)
    mask_full = jnp.broadcast_to(causal, (B, H, S, S))
    ctx_m, attn_m = jax.jit(scaled_dot_product_attention)(Q, K, V, mask_full)
    jax.block_until_ready((ctx_m, attn_m))
    rctx_m, rattn_m = _sdpa_ref(Q, K, V, mask_full)
    assert jnp.allclose(ctx_m, rctx_m, atol=2e-3, rtol=2e-3)
    assert jnp.allclose(attn_m, rattn_m, atol=2e-3, rtol=2e-3)

    # 3) Broadcast [1, 1, S, S] mask exercises the bh->0 BlockSpec branch.
    ctx_b, attn_b = jax.jit(scaled_dot_product_attention)(Q, K, V, causal[None, None])
    jax.block_until_ready((ctx_b, attn_b))
    assert jnp.allclose(ctx_b, rctx_m, atol=2e-3, rtol=2e-3)
    assert jnp.allclose(attn_b, rattn_m, atol=2e-3, rtol=2e-3)

    # 4) (8,128)-aligned shape exercising the q-tiling path (tq=256, 2 q tiles).
    B2, H2, S2, D2 = 1, 2, 512, 128
    k1, k2, k3 = jax.random.split(jax.random.PRNGKey(1), 3)
    Q2 = jax.random.normal(k1, (B2, H2, S2, D2), jnp.float32)
    K2 = jax.random.normal(k2, (B2, H2, S2, D2), jnp.float32)
    V2 = jax.random.normal(k3, (B2, H2, S2, D2), jnp.float32)
    ctx2, attn2 = jax.jit(scaled_dot_product_attention)(Q2, K2, V2)
    jax.block_until_ready((ctx2, attn2))
    rctx2, rattn2 = _sdpa_ref(Q2, K2, V2)
    assert jnp.allclose(ctx2, rctx2, atol=2e-3, rtol=2e-3)
    assert jnp.allclose(attn2, rattn2, atol=2e-3, rtol=2e-3)

    # 5) bf16 smoke test: bf16 MXU operands, f32 softmax, bf16 outputs.
    ctx3, attn3 = jax.jit(scaled_dot_product_attention)(
        Q.astype(jnp.bfloat16), K.astype(jnp.bfloat16), V.astype(jnp.bfloat16))
    jax.block_until_ready((ctx3, attn3))
    assert ctx3.dtype == jnp.bfloat16 and attn3.dtype == jnp.bfloat16
    assert bool(jnp.all(jnp.isfinite(ctx3.astype(jnp.float32))))
    assert bool(jnp.all(jnp.isfinite(attn3.astype(jnp.float32))))

    print("KERNEL_OK")
</pallas_src>

<mosaic_0001>
module attributes {stable_mosaic.version = 11 : i64} {
  func.func @_sdpa_kernel(%arg0: i32, %arg1: i32, %arg2: memref<1x8x8xf32, #tpu.memory_space<vmem>>, %arg3: memref<1x8x8xf32, #tpu.memory_space<vmem>>, %arg4: memref<1x8x8xf32, #tpu.memory_space<vmem>>, %arg5: memref<1x8x8xf32, #tpu.memory_space<vmem>>, %arg6: memref<1x8x8xf32, #tpu.memory_space<vmem>>) attributes {dimension_semantics = [#tpu.dimension_semantics<parallel>, #tpu.dimension_semantics<parallel>], iteration_bounds = array<i64: 8, 1>, scalar_prefetch = 0 : i64, scratch_operands = 0 : i64, tpu.core_type = #tpu.core_type<tc>, window_params = [{transform_indices = @transform_0, window_bounds = array<i64: 1, 8, 8>}, {transform_indices = @transform_1, window_bounds = array<i64: 1, 8, 8>}, {transform_indices = @transform_2, window_bounds = array<i64: 1, 8, 8>}, {transform_indices = @transform_3, window_bounds = array<i64: 1, 8, 8>}, {transform_indices = @transform_4, window_bounds = array<i64: 1, 8, 8>}]} {
    %c0 = arith.constant 0 : index
    %c0_0 = arith.constant 0 : index
    %c0_1 = arith.constant 0 : index
    %0 = vector.load %arg2[%c0, %c0_0, %c0_1] : memref<1x8x8xf32, #tpu.memory_space<vmem>>, vector<1x8x8xf32>
    %1 = vector.shape_cast %0 : vector<1x8x8xf32> to vector<8x8xf32>
    %c0_2 = arith.constant 0 : index
    %c0_3 = arith.constant 0 : index
    %c0_4 = arith.constant 0 : index
    %2 = vector.load %arg3[%c0_2, %c0_3, %c0_4] : memref<1x8x8xf32, #tpu.memory_space<vmem>>, vector<1x8x8xf32>
    %3 = vector.shape_cast %2 : vector<1x8x8xf32> to vector<8x8xf32>
    %c0_5 = arith.constant 0 : index
    %c0_6 = arith.constant 0 : index
    %c0_7 = arith.constant 0 : index
    %4 = vector.load %arg4[%c0_5, %c0_6, %c0_7] : memref<1x8x8xf32, #tpu.memory_space<vmem>>, vector<1x8x8xf32>
    %5 = vector.shape_cast %4 : vector<1x8x8xf32> to vector<8x8xf32>
    %cst = arith.constant dense<0.000000e+00> : vector<8x8xf32>
    %6 = tpu.matmul %1, %3, %cst {dimension_numbers = #tpu.dot_dimension_numbers<[1], [1], [0], [0], [0, 0, 1, 0], [], []>, precision = #tpu.contract_precision<fp32>} : vector<8x8xf32>, vector<8x8xf32>, vector<8x8xf32> -> vector<8x8xf32>
    %cst_8 = arith.constant 0.353553385 : f32
    %7 = vector.broadcast %cst_8 : f32 to vector<8x8xf32>
    %8 = arith.mulf %6, %7 : vector<8x8xf32>
    %cst_9 = arith.constant dense<0xFF800000> : vector<8xf32>
    %9 = vector.multi_reduction <maximumf>, %8, %cst_9 [1] : vector<8x8xf32> to vector<8xf32>
    %10 = vector.shape_cast %9 : vector<8xf32> to vector<8x1xf32>
    %11 = vector.broadcast %10 : vector<8x1xf32> to vector<8x8xf32>
    %12 = arith.subf %8, %11 : vector<8x8xf32>
    %13 = math.exp %12 : vector<8x8xf32>
    %cst_10 = arith.constant dense<0.000000e+00> : vector<8xf32>
    %14 = vector.multi_reduction <add>, %13, %cst_10 [1] : vector<8x8xf32> to vector<8xf32>
    %15 = vector.shape_cast %14 : vector<8xf32> to vector<8x1xf32>
    %16 = vector.broadcast %15 : vector<8x1xf32> to vector<8x8xf32>
    %17 = arith.divf %13, %16 : vector<8x8xf32>
    %c0_11 = arith.constant 0 : index
    %c0_12 = arith.constant 0 : index
    %c0_13 = arith.constant 0 : index
    %18 = vector.load %arg6[%c0_11, %c0_12, %c0_13] : memref<1x8x8xf32, #tpu.memory_space<vmem>>, vector<1x8x8xf32>
    %19 = vector.shape_cast %18 : vector<1x8x8xf32> to vector<8x8xf32>
    %20 = vector.shape_cast %17 : vector<8x8xf32> to vector<1x8x8xf32>
    tpu.vector_store %arg6[%c0_11, %c0_12, %c0_13], %20 {strides = array<i32>} : memref<1x8x8xf32, #tpu.memory_space<vmem>>, vector<1x8x8xf32>,
    %cst_14 = arith.constant dense<0.000000e+00> : vector<8x8xf32>
    %21 = tpu.matmul %17, %5, %cst_14 {dimension_numbers = #tpu.dot_dimension_numbers<[1], [0], [0], [1], [0, 0, 1, 1], [], []>, precision = #tpu.contract_precision<fp32>} : vector<8x8xf32>, vector<8x8xf32>, vector<8x8xf32> -> vector<8x8xf32>
    %c0_15 = arith.constant 0 : index
    %c0_16 = arith.constant 0 : index
    %c0_17 = arith.constant 0 : index
    %22 = vector.load %arg5[%c0_15, %c0_16, %c0_17] : memref<1x8x8xf32, #tpu.memory_space<vmem>>, vector<1x8x8xf32>
    %23 = vector.shape_cast %22 : vector<1x8x8xf32> to vector<8x8xf32>
    %24 = vector.shape_cast %21 : vector<8x8xf32> to vector<1x8x8xf32>
    tpu.vector_store %arg5[%c0_15, %c0_16, %c0_17], %24 {strides = array<i32>} : memref<1x8x8xf32, #tpu.memory_space<vmem>>, vector<1x8x8xf32>,
    return
  }
  func.func @transform_0(%arg0: i32, %arg1: i32) -> (i32, i32, i32) {
    %c0_i32 = arith.constant 0 : i32
    %c0_i32_0 = arith.constant 0 : i32
    return %arg0, %arg1, %c0_i32 : i32, i32, i32
  }
  func.func @transform_1(%arg0: i32, %arg1: i32) -> (i32, i32, i32) {
    %c0_i32 = arith.constant 0 : i32
    %c0_i32_0 = arith.constant 0 : i32
    %c0_i32_1 = arith.constant 0 : i32
    return %arg0, %c0_i32, %c0_i32_0 : i32, i32, i32
  }
  func.func @transform_2(%arg0: i32, %arg1: i32) -> (i32, i32, i32) {
    %c0_i32 = arith.constant 0 : i32
    %c0_i32_0 = arith.constant 0 : i32
    %c0_i32_1 = arith.constant 0 : i32
    return %arg0, %c0_i32, %c0_i32_0 : i32, i32, i32
  }
  func.func @transform_3(%arg0: i32, %arg1: i32) -> (i32, i32, i32) {
    %c0_i32 = arith.constant 0 : i32
    %c0_i32_0 = arith.constant 0 : i32
    return %arg0, %arg1, %c0_i32 : i32, i32, i32
  }
  func.func @transform_4(%arg0: i32, %arg1: i32) -> (i32, i32, i32) {
    %c0_i32 = arith.constant 0 : i32
    %c0_i32_0 = arith.constant 0 : i32
    return %arg0, %arg1, %c0_i32 : i32, i32, i32
  }
}

</mosaic_0001>

<bundles_post_ra>
// kernel: scaled_dot_product_attention.1
= control target key start
LH: loop header
LB: loop body
LE: loop exit
PB: predicated region body
PF: predicated region fallthrough
CT: control target
= control target key end

     0   :  { %s2211_s0 = inlined_call_operand.hbm [shape: f32[8,8,8], index: 0, kind: input, shape index: {}]   ;;  %s2212_s1 = inlined_call_operand.hbm [shape: f32[8,8,8], index: 1, kind: input, shape index: {}]   ;;  %s2213_s2 = inlined_call_operand.hbm [shape: f32[8,8,8], index: 2, kind: input, shape index: {}]   ;;  %s2214_s3 = inlined_call_operand.hbm [shape: f32[8,8,8], index: 3, kind: output, shape index: {0}]   ;;  %s2215_s4 = inlined_call_operand.hbm [shape: f32[8,8,8], index: 4, kind: output, shape index: {1}]  }
   0x1   :  { %2223 = sst [smem:[#allocation19_spill]] %s2212_s1 }
   0x2   :  { %10 = vsyncpa [#allocation3], 0 }
   0x3   :  { %12 = vsyncpa [#allocation3 + $0x1], 0 }
   0x4   :  { %13 = vsyncpa [#allocation6], 0 }
   0x5   :  { %15 = vsyncpa [#allocation6 + $0x1], 0 }
   0x6   :  { %16 = vsyncpa [#allocation4], 0 }
   0x7   :  { %18 = vsyncpa [#allocation4 + $0x1], 0 }
   0x8   :  { %19 = vsyncpa [#allocation10], 0 }
   0x9   :  { %21 = vsyncpa [#allocation10 + $0x1], 0  ;;  %s1874_s15 = smov 0   ;;  %s1876_s16 = smov 0  }
   0xa   :  { %s1878_s17 = smov 0   ;;  %s1880_s18 = smov 0  }
   0xb   :  { %s1882_s19 = smov 0   ;;  %s1884_s20 = smov 0  }
   0xc LB: > { %2224 = sst [smem:[#allocation15_spill]] %s1836_s19  ;;  %s1905_s21 = sadd.s32 4294967295, %s1840_s20   ;;  %s1840_s20 = sphi %s1884_s20, %s27_s20   ;;  %s1836_s19 = sphi %s1882_s19, %s2247_s19   ;;  %s1832_s18 = sphi %s1880_s18, %s2246_s18   ;;  %s1828_s17 = sphi %s1878_s17, %s2250_s17   ;;  %s1824_s16 = sphi %s1876_s16, %s2249_s16   ;;  %s1820_s15 = sphi %s1874_s15, %s2248_s15  }
   0xd   : > { %s1424_s22 = sadd.s32 4294967294, %s1840_s20   ;;  %s39_s23 = sadd.s32 1, %s1836_s19 }
   0xe   : > { %s48_s24 = sadd.s32 1, %s1828_s17  ;;  %p41_p0 = scmp.ge.s32.totalorder %s39_s23, 8 }
   0xf   : > { %p55_p1 = scmp.ne.s32.totalorder %s1828_s17, %s1824_s16  ;;  %p56_p2 = scmp.eq.s32.totalorder %s1840_s20, 0 }
  0x10   : > { %p61_p3 = scmp.ne.s32.totalorder %s1824_s16, %s1820_s15  ;;  %s2252_s23 = smov (%p41_p0, %s39_s23), 0 }
  0x11   : > { %2225 = sst [smem:[#allocation16_spill]] %s2252_s23  ;;  %p1917_p4 = por %p56_p2, %p55_p1 }
  0x12   : > { %p62_p5 = scmp.eq.s32.totalorder %s1905_s21, 0  ;;  %s43_s26 = ssub.s32 %s1836_s19, %s2252_s23 }
  0x13   : > { %p139_p6 = scmp.eq.s32.totalorder %s1905_s21, 7  ;;  %p46_p7 = scmp.eq.s32.totalorder %s43_s26, 0 }
  0x14   : > { %p1925_p8 = por %p62_p5, %p61_p3  ;;  %p145_p10 = scmp.eq.s32.totalorder %s1424_s22, 7 }
  0x15   : > { %p1929_p9 = por %p139_p6, %p55_p1  ;;  %p1576_p12 = scmp.lt.s32.totalorder %s1840_s20, 8 }
  0x16   : > { %s2227_s27 = scalar_select %p1925_p8, 1, 0 }
  0x17   : > { %s2228_s28 = scalar_select %p1929_p9, 1, 0 }
  0x18   : > { %s1934_s29 = scalar_select %p46_p7, %s1828_s17, %s48_s24  }
  0x19   : > { %p1936_p11 = por %p145_p10, %p61_p3  ;;  %s2216_s5 = sand.u32 1, %s1828_s17  }
  0x1a   : > { %2229 = sst [smem:[#allocation17_spill]] %s1934_s29  ;;  %s1944_s6 = sshll.u32 %s2216_s5, 3 }
  0x1b   : > { %s2230_s30 = scalar_select %p1936_p11, 1, 0 }
  0x1c   : > { %s1947_s7 = sshll.u32 %s1836_s19, 7  ;;  %p1951_p13 = pnand %p1576_p12, %p1917_p4 }
  0x1d   : > { %2231 = sst [smem:[#allocation18_spill]] %s2230_s30  ;;  %s212_s9 = sand.u32 1, %s1840_s20  }
  0x1e   : > { %s2232_s8 = scalar_select %p1951_p13, 1, 0 }
  0x1f   : > { %s2233_s1 = sld [smem:[#allocation19_spill]]  ;;  %s216_s13 = scalar_lea.vmem [#allocation5], %s1944_s6 }
  0x20   : > { %s223_s14 = sshll.u32 %s216_s13, 4  ;;  %s1967_s22 = scalar_lea.sflag [#allocation6], %s212_s9  ;;  %s1964_s14 = int_to_ptr.vmem [resolvable:$true] %s223_s14 }
  0x21   : > { %p1973_p3 = pneg %p1951_p13 }
  0x25   : > { %s1960_s12 = scalar_lea.hbm %s2233_s1, %s1947_s7  ;;  %s1637_s11 = scalar_lea.hbm %s2233_s1, 1024 }
  0x26   : > { %s1632_s24 = scalar_lea.hbm %s1960_s12, 128  ;;  %p1638_p6 = scmp.lt.u32.totalorder %s1960_s12, %s2233_s1 }
  0x27   : > { %p1633_p2 = scmp.ne.s32.totalorder %s1960_s12, %s1632_s24  ;;  %p1639_p7 = scmp.lt.u32.totalorder %s1637_s11, %s1632_s24 }
  0x28   : > { %p1641_p12 = scmp.lt.u32.totalorder %s1632_s24, %s1960_s12 }
  0x29   : > { %p1635_p4 = pnand %p1973_p3, %p1633_p2  ;;  %p1640_p10 = por %p1639_p7, %p1638_p6 }
  0x2b   : > { %p1636_p5 = pneg %p1635_p4  ;;  %p1642_p0 = por %p1641_p12, %p1640_p10 }
  0x2d   : > { %p1643_p1 = pnand %p1642_p0, %p1636_p5 }
  0x2f   : > { %1646 = shalt.err (!%p1643_p1)
}
  0x30   : > { %s1647_s9 = scalar_lea.vmem %s1964_s14, 128  ;;  %s1842_s26 = smov [#allocation5]  }
  0x31   : > { %p1648_p2 = scmp.ne.s32.totalorder %s1964_s14, %s1647_s9  ;;  %s1652_s10 = sshll.u32 %s1842_s26, 4  ;;  %s1653_s10 = int_to_ptr.vmem [resolvable:$false] %s1652_s10 }
  0x32   : > { %s1654_s5 = scalar_lea.vmem %s1653_s10, 256  ;;  %p1655_p9 = scmp.lt.s32.totalorder %s1964_s14, %s1653_s10 }
  0x33   : > { %p1650_p4 = pnand %p1648_p2, %p1973_p3  ;;  %p1656_p8 = scmp.lt.s32.totalorder %s1654_s5, %s1647_s9 }
  0x35   : > { %p1651_p11 = pneg %p1650_p4  ;;  %p1657_p6 = por %p1656_p8, %p1655_p9 }
  0x37   : > { %p1658_p7 = pnand %p1657_p6, %p1651_p11 }
  0x39   : > { %1661 = shalt.err (!%p1658_p7)
}
  0x3a   : > { %1565 = dma.hbm_to_vmem [thread:$0]  (!%p1951_p13), %s1960_s12, 128, %s1964_s14, %s1967_s22  }
  0x3b   : > { %p2235_p0 = scmp.lt.s32.totalorder %s1840_s20, 9  ;;  %p2236_p1 = scmp.ge.s32.totalorder %s1840_s20, 1 }
  0x3c   : > { %s2009_s9 = scalar_lea.hbm %s2211_s0, %s1947_s7  ;;  %s197_s26 = scalar_lea.vmem [#allocation2], %s1944_s6 }
  0x3d   : > { %p2001_p5 = pnand %p2236_p1, %p2235_p0  ;;  %s205_s10 = sshll.u32 %s197_s26, 4  ;;  %s2012_s10 = int_to_ptr.vmem [resolvable:$true] %s205_s10 }
  0x3e   : > { %s2018_s5 = scalar_lea.hbm %s2213_s2, %s1947_s7  ;;  %s2238_s1 = sand.u32 1, %s1828_s17  }
  0x3f   : > { %s2237_s24 = scalar_select %p2001_p5, 1, 0 }
  0x40   : > { %s194_s23 = scalar_lea.sflag [#allocation3], %s2238_s1  ;;  %s1662_s19 = scalar_lea.hbm %s2009_s9, 128 }
  0x41   : > { %p1663_p8 = scmp.ne.s32.totalorder %s2009_s9, %s1662_s19  ;;  %s1667_s29 = scalar_lea.hbm %s2211_s0, 1024 }
  0x42   : > { %p1668_p10 = scmp.lt.u32.totalorder %s2009_s9, %s2211_s0  ;;  %p1669_p12 = scmp.lt.u32.totalorder %s1667_s29, %s1662_s19 }
  0x43   : > { %p1665_p9 = pnand %p1663_p8, %p1973_p3  ;;  %p1671_p4 = scmp.lt.u32.totalorder %s1662_s19, %s2009_s9 }
  0x44   : > { %p1670_p2 = por %p1669_p12, %p1668_p10 }
  0x45   : > { %p1666_p11 = pneg %p1665_p9 }
  0x46   : > { %p1672_p6 = por %p1671_p4, %p1670_p2 }
  0x48   : > { %p1673_p7 = pnand %p1672_p6, %p1666_p11 }
  0x4a   : > { %1676 = shalt.err (!%p1673_p7)
}
  0x4b   : > { %s1677_s1 = scalar_lea.vmem %s2012_s10, 128  ;;  %s1843_s7 = smov [#allocation2]  }
  0x4c   : > { %p1678_p0 = scmp.ne.s32.totalorder %s2012_s10, %s1677_s1  ;;  %s1682_s12 = sshll.u32 %s1843_s7, 4  ;;  %s1683_s12 = int_to_ptr.vmem [resolvable:$false] %s1682_s12 }
  0x4d   : > { %s1684_s30 = scalar_lea.vmem %s1683_s12, 256  ;;  %p1685_p9 = scmp.lt.s32.totalorder %s2012_s10, %s1683_s12 }
  0x4e   : > { %p1680_p1 = pnand %p1678_p0, %p1973_p3  ;;  %p1686_p5 = scmp.lt.s32.totalorder %s1684_s30, %s1677_s1 }
  0x50   : > { %p1681_p8 = pneg %p1680_p1  ;;  %p1687_p10 = por %p1686_p5, %p1685_p9 }
  0x52   : > { %p1688_p12 = pnand %p1687_p10, %p1681_p8 }
  0x54   : > { %1691 = shalt.err (!%p1688_p12)
}
  0x55   : > { %1562 = dma.hbm_to_vmem [thread:$0]  (!%p1951_p13), %s2009_s9, 128, %s2012_s10, %s194_s23  }
  0x56   : > { %s234_s19 = scalar_lea.vmem [#allocation7], %s1944_s6  ;;  %s1692_s14 = scalar_lea.hbm %s2018_s5, 128 }
  0x57   : > { %s241_s29 = sshll.u32 %s234_s19, 4  ;;  %p1693_p11 = scmp.ne.s32.totalorder %s2018_s5, %s1692_s14  ;;  %s242_s29 = int_to_ptr.vmem [resolvable:$true] %s241_s29 }
  0x58   : > { %s1697_s26 = scalar_lea.hbm %s2213_s2, 1024  ;;  %p1698_p4 = scmp.lt.u32.totalorder %s2018_s5, %s2213_s2 }
  0x59   : > { %p1695_p5 = pnand %p1693_p11, %p1973_p3  ;;  %p1699_p6 = scmp.lt.u32.totalorder %s1697_s26, %s1692_s14 }
  0x5a   : > { %p1701_p0 = scmp.lt.u32.totalorder %s1692_s14, %s2018_s5 }
  0x5b   : > { %p1696_p2 = pneg %p1695_p5  ;;  %p1700_p7 = por %p1699_p6, %p1698_p4 }
  0x5d   : > { %p1702_p1 = por %p1701_p0, %p1700_p7 }
  0x5f   : > { %p1703_p8 = pnand %p1702_p1, %p1696_p2 }
  0x61   : > { %1706 = shalt.err (!%p1703_p8)
}
  0x62   : > { %s1707_s23 = scalar_lea.vmem %s242_s29, 128  ;;  %s1844_s6 = smov [#allocation7]  }
  0x63   : > { %p1708_p9 = scmp.ne.s32.totalorder %s242_s29, %s1707_s23  ;;  %s1712_s9 = sshll.u32 %s1844_s6, 4  ;;  %s1713_s9 = int_to_ptr.vmem [resolvable:$false] %s1712_s9 }
  0x64   : > { %s1714_s10 = scalar_lea.vmem %s1713_s9, 256  ;;  %p1715_p11 = scmp.lt.s32.totalorder %s242_s29, %s1713_s9 }
  0x65   : > { %p1710_p10 = pnand %p1708_p9, %p1973_p3  ;;  %p1716_p5 = scmp.lt.s32.totalorder %s1714_s10, %s1707_s23 }
  0x67   : > { %p1711_p12 = pneg %p1710_p10  ;;  %p1717_p13 = por %p1716_p5, %p1715_p11 }
  0x69   : > { %p1718_p4 = pnand %p1717_p13, %p1711_p12 }
  0x6b   : > { %1721 = shalt.err (!%p1718_p4)
}
  0x6c   : > { %p2239_p6 = scmp.ne.s32.totalorder %s2232_s8, 0  ;;  %p2240_p2 = scmp.ne.s32.totalorder %s2237_s24, 0 }
  0x6d   : > { %s2065_s25 = sand.u32 (!%p2240_p2), 1, %s1824_s16   ;;  %p2241_p13 = scmp.ne.s32.totalorder (!%p2240_p2), %s2227_s27, 0 }
  0x6e   : > { %1568 = dma.hbm_to_vmem [thread:$0]  (!%p2239_p6), %s2018_s5, 128, %s242_s29, %s1967_s22  }
  0x6f   : > { %250 = sbr.rel (%p2240_p2) target bundleno = 979 (0x3d3), region = 32  ;;  %s2068_s12 = sshll.u32 (!%p2240_p2), %s2065_s25, 3 }
  0x70   : > { %s253_s30 = scalar_lea.sflag (!%p2240_p2), [#allocation3], %s2065_s25  ;;  %s256_s19 = scalar_lea.vmem (!%p2240_p2), [#allocation2], %s2068_s12 }
  0x76   : > { %1803 = dma.done.wait (%p2241_p13), %s253_s30, 128  }
  0x77   : > { %1805 = vsyncadd (%p2241_p13), %s253_s30, 4294967168  ;;  %s261_s8 = sand.u32 1, %s1905_s21   ;;  %s265_s24 = scalar_lea.vmem [#allocation5], %s2068_s12 }
  0x78   : > { %s262_s22 = scalar_lea.sflag [#allocation6], %s261_s8 }
  0x79   : > { %1807 = dma.done.wait (%p2241_p13), %s262_s22, 256  }
  0x7a   : > { %1809 = vsyncadd (%p2241_p13), %s262_s22, 4294967040  ;;  %v1845_v0 = vmov 0.0   ;;  %vm1846_vm0 = vmmov 0   ;;  %vm317_vm1 = vcmask 64512   ;;  %v315_v1 = vld [vmem:[%s265_s24] sm:$0xff]  ;;  %v314_v2 = vld [vmem:[%s256_s19] sm:$0xff] }
  0x7b   : > { %1469 = vmatprep.subr.mxu0 %v1845_v0  ;;  %1471 = vmatprep.mubr.msk.f32.mxu0 %vm1846_vm0, %v1845_v0  ;;  %v322_v3 = vsel %vm317_vm1, %v315_v1, 0  ;;  %v319_v4 = vsel %vm317_vm1, %v314_v2, 0  ;;  %s274_s21 = scalar_lea.vmem [#allocation7], %s2068_s12  ;;  %s313_s27 = scalar_lea.vmem [#allocation9], %s2068_s12 }
  0x7c   : > { %1499 = vmatprep.subr.mxu1 %v1845_v0  ;;  %1501 = vmatprep.mubr.msk.f32.mxu1 %vm1846_vm0, %v1845_v0  ;;  %v325_v5 = vand.u32 4294901760, %v322_v3  ;;  %v390_v6 = vand.u32 4294901760, %v319_v4  ;;  %v316_v24 = vld [vmem:[%s274_s21] sm:$0xff]  ;;  %s1441_s5 = sshll.u32 %s1832_s18, 7  ;;  %s1267_s13 = sshll.u32 %s313_s27, 4  ;;  %s1268_s13 = int_to_ptr.vmem [resolvable:$true] %s1267_s13 }
  0x7d   : > { %v787_v25 = vand.u32 4294901760, %v316_v24  ;;  %s2134_s11 = scalar_lea.hbm %s2215_s4, %s1441_s5  ;;  %s1239_s26 = scalar_lea.sflag [#allocation10], %s2065_s25 }
  0x7e   : > { %1470 = vmatpush3.xpose.msra.mxu0 %v325_v5  ;;  %v402_v7 = vsub.f32 %v322_v3, %v325_v5  ;;  %v391_v8 = vsub.f32 %v319_v4, %v390_v6  ;;  %s1722_s1 = scalar_lea.vmem %s1268_s13, 128  ;;  %p2242_p7 = scmp.ne.s32.totalorder %s2228_s28, 0 }
  0x7f   : > { %1474 = vmatprep.subr.mxu0 %v1845_v0  ;;  %1500 = vmatpush3.msra.mxu1 %v787_v25  ;;  %v864_v27 = vsub.f32 %v316_v24, %v787_v25  ;;  %p1723_p3 = scmp.ne.s32.totalorder %s1268_s13, %s1722_s1  ;;  %s1847_s7 = smov [#allocation9]  }
  0x80   : > { %v392_v9 = vand.u32 4294901760, %v391_v8  ;;  %v403_v10 = vand.u32 4294901760, %v402_v7  ;;  %1504 = vmatprep.subr.mxu1 %v1845_v0  ;;  %s1726_s23 = sshll.u32 %s1847_s7, 4  ;;  %s1727_s23 = int_to_ptr.vmem [resolvable:$false] %s1726_s23 }
  0x81   : > { %v865_v31 = vand.u32 4294901760, %v864_v27  ;;  %p1724_p0 = pnand %p1723_p3, %p2242_p7  ;;  %s1728_s6 = scalar_lea.vmem %s1727_s23, 256 }
  0x82   : > { %v393_v11 = vsub.f32 %v391_v8, %v392_v9  ;;  %v404_v12 = vsub.f32 %v402_v7, %v403_v10  ;;  %p1729_p8 = scmp.lt.s32.totalorder %s1268_s13, %s1727_s23  ;;  %p1730_p9 = scmp.lt.s32.totalorder %s1728_s6, %s1722_s1 }
  0x83   : > { %v866_v34 = vsub.f32 %v864_v27, %v865_v31  ;;  %p1725_p1 = pneg %p1724_p0 }
  0x84   : > { %v394_v13 = vand.u32 4294901760, %v393_v11  ;;  %v405_v14 = vand.u32 4294901760, %v404_v12  ;;  %p1731_p10 = por %p1730_p9, %p1729_p8 }
  0x85   : > { %v867_v37 = vand.u32 4294901760, %v866_v34 }
  0x86   : > { %1472 = vmatmul.mubr.f32.vlgmr.msra.gmra.mrb[0].mxu0 %v394_v13  ;;  %p1732_p12 = pnand %p1731_p10, %p1725_p1 }
  0x87   : > { %1475 = vmatpush3.xpose.msra.mxu0 %v405_v14  ;;  %1476 = vmatprep.mubr.msk.f32.mxu0 %vm1846_vm0, %v1845_v0 }
  0x88   : > { %1479 = vmatprep.subr.mxu0 %v1845_v0 }
  0x8e   : > { %1477 = vmatmul.mubr.f32.vlgmr.msra.gmra.mrb[0].mxu0 %v390_v6 }
  0x8f   : > { %1480 = vmatpush3.xpose.msra.mxu0 %v402_v7  ;;  %1481 = vmatprep.mubr.msk.f32.mxu0 %vm1846_vm0, %v1845_v0 }
  0x90   : > { %1484 = vmatprep.subr.mxu0 %v1845_v0 }
  0x96   : > { %1482 = vmatmul.mubr.f32.vlgmr.msra.gmra.mrb[0].mxu0 %v391_v8 }
  0x97   : > { %1485 = vmatpush3.xpose.msra.mxu0 %v325_v5  ;;  %1486 = vmatprep.mubr.msk.f32.mxu0 %vm1846_vm0, %v1845_v0 }
  0x98   : > { %1489 = vmatprep.subr.mxu0 %v1845_v0 }
  0x9e   : > { %1487 = vmatmul.mubr.f32.vlgmr.msra.gmra.mrb[0].mxu0 %v392_v9 }
  0x9f   : > { %1490 = vmatpush3.xpose.msra.mxu0 %v403_v10  ;;  %1491 = vmatprep.mubr.msk.f32.mxu0 %vm1846_vm0, %v1845_v0 }
  0xa0   : > { %1494 = vmatprep.subr.mxu0 %v1845_v0 }
  0xa6   : > { %1492 = vmatmul.mubr.f32.vlgmr.msra.gmra.mrb[0].mxu0 %v390_v6 }
  0xa7   : > { %1495 = vmatpush3.xpose.msra.mxu0 %v325_v5  ;;  %1496 = vmatprep.mubr.msk.f32.mxu0 %vm1846_vm0, %v1845_v0 }
  0xae   : > { %1497 = vmatmul.mubr.f32.vlgmr.msra.gmra.mrb[0].mxu0 %v390_v6 }
 0x181   : > { %v766_v15 = vpop.f32.mrb[0].mxu0 }
 0x182   : > { %v770_v16 = vmul.f32 0.35355338, %v766_v15  ;;  %v1498_v17 = vpop.f32.mrb[1].mxu0 }
 0x184   : > { %v771_v18 = vsel %vm317_vm1, %v770_v16, -inf }
 0x185   : > { %772 = vmax.xlane.f32.xlu0 %v771_v18 }
 0x212   : > { %v773_v19 = vpop.xlane.xlu0 %772 }
 0x213   : > { %v774_v20 = vsub.f32 %v770_v16, %v773_v19 }
 0x215   : > { %v775_v21 = vmul.f32 1.442695, %v774_v20 }
 0x217   : > { %1628 = vpow2.f32 %v775_v21 }
 0x221   : > { %v1629_v22 = vpop.eup %1628 }
 0x222   : > { %v777_v23 = vsel %vm317_vm1, %v1629_v22, 0.0 }
 0x223   : > { %778 = vadd.xlane.f32.xlu0 %v777_v23 }
 0x2b0   : > { %v779_v26 = vpop.xlane.xlu0 %778 }
 0x2b1   : > { %1630 = vrcp.f32 %v779_v26 }
 0x2bb   : > { %v1631_v28 = vpop.eup %1630 }
 0x2bc   : > { %v781_v29 = vmul.f32 %v1631_v28, %v1629_v22 }
 0x2be   : > { %v784_v30 = vsel %vm317_vm1, %v781_v29, 0  ;;  %782 = vst.msk [vmem:[%s313_s27] sm:$0xff] %vm317_vm1, %v781_v29 }
 0x2bf   : > { %v852_v32 = vand.u32 4294901760, %v784_v30 }
 0x2c1   : > { %v853_v33 = vsub.f32 %v784_v30, %v852_v32 }
 0x2c3   : > { %v854_v35 = vand.u32 4294901760, %v853_v33 }
 0x2c5   : > { %v855_v36 = vsub.f32 %v853_v33, %v854_v35 }
 0x2c7   : > { %v856_v38 = vand.u32 4294901760, %v855_v36 }
 0x2c9   : > { %1502 = vmatmul.mubr.f32.vlgmr.msra.gmra.mrb[0].mxu1 %v856_v38 }
 0x2ca   : > { %1505 = vmatpush3.msra.mxu1 %v867_v37  ;;  %1506 = vmatprep.mubr.msk.f32.mxu1 %vm1846_vm0, %v1845_v0 }
 0x2cb   : > { %1509 = vmatprep.subr.mxu1 %v1845_v0 }
 0x2d1   : > { %1507 = vmatmul.mubr.f32.vlgmr.msra.gmra.mrb[0].mxu1 %v852_v32 }
 0x2d2   : > { %1510 = vmatpush3.msra.mxu1 %v864_v27  ;;  %1511 = vmatprep.mubr.msk.f32.mxu1 %vm1846_vm0, %v1845_v0 }
 0x2d3   : > { %1514 = vmatprep.subr.mxu1 %v1845_v0 }
 0x2d9   : > { %1512 = vmatmul.mubr.f32.vlgmr.msra.gmra.mrb[0].mxu1 %v853_v33 }
 0x2da   : > { %1515 = vmatpush3.msra.mxu1 %v787_v25  ;;  %1516 = vmatprep.mubr.msk.f32.mxu1 %vm1846_vm0, %v1845_v0 }
 0x2db   : > { %1519 = vmatprep.subr.mxu1 %v1845_v0 }
 0x2e1   : > { %1517 = vmatmul.mubr.f32.vlgmr.msra.gmra.mrb[0].mxu1 %v854_v35 }
 0x2e2   : > { %1520 = vmatpush3.msra.mxu1 %v865_v31  ;;  %1521 = vmatprep.mubr.msk.f32.mxu1 %vm1846_vm0, %v1845_v0 }
 0x2e3   : > { %1524 = vmatprep.subr.mxu1 %v1845_v0 }
 0x2e9   : > { %1522 = vmatmul.mubr.f32.vlgmr.msra.gmra.mrb[0].mxu1 %v852_v32 }
 0x2ea   : > { %1525 = vmatpush3.msra.mxu1 %v787_v25  ;;  %1526 = vmatprep.mubr.msk.f32.mxu1 %vm1846_vm0, %v1845_v0 }
 0x2f1   : > { %1527 = vmatmul.mubr.f32.vlgmr.msra.gmra.mrb[0].mxu1 %v852_v32 }
 0x2f2   : > { %1735 = shalt.err (!%p1732_p12)
}
 0x2f3   : > { %s1736_s9 = scalar_lea.hbm %s2134_s11, 128  ;;  %s1740_s19 = scalar_lea.hbm %s2215_s4, 1024 }
 0x2f4   : > { %p1737_p11 = scmp.ne.s32.totalorder %s2134_s11, %s1736_s9  ;;  %p1741_p6 = scmp.lt.u32.totalorder %s2134_s11, %s2215_s4 }
 0x2f5   : > { %p1742_p2 = scmp.lt.u32.totalorder %s1740_s19, %s1736_s9  ;;  %p1744_p3 = scmp.lt.u32.totalorder %s1736_s9, %s2134_s11 }
 0x2f6   : > { %p1738_p5 = pnand %p1737_p11, %p2242_p7 }
 0x2f7   : > { %p1743_p13 = por %p1742_p2, %p1741_p6 }
 0x2f8   : > { %p1739_p4 = pneg %p1738_p5 }
 0x2f9   : > { %p1745_p0 = por %p1744_p3, %p1743_p13 }
 0x2fb   : > { %p1746_p1 = pnand %p1745_p0, %p1739_p4 }
 0x2fd   : > { %1749 = shalt.err (!%p1746_p1)
}
 0x2fe   : > { %1556 = dma.vmem_to_hbm [thread:$0]  (%p2242_p7), %s1268_s13, 128, %s2134_s11, %s1239_s26  }
 0x2ff   : > { %s306_s24 = scalar_lea.vmem [#allocation8], %s2068_s12  ;;  %s2162_s14 = scalar_lea.hbm %s2214_s3, %s1441_s5 }
 0x300   : > { %s1253_s21 = sshll.u32 %s306_s24, 4  ;;  %s1234_s1 = scalar_lea.sflag [#allocation4], %s2065_s25  ;;  %s2164_s21 = int_to_ptr.vmem [resolvable:$true] %s1253_s21 }
 0x301   : > { %s1750_s7 = scalar_lea.vmem %s2164_s21, 128  ;;  %s1848_s18 = smov [#allocation8]  }
 0x302   : > { %p1751_p8 = scmp.ne.s32.totalorder %s2164_s21, %s1750_s7  ;;  %s1754_s12 = sshll.u32 %s1848_s18, 4  ;;  %s1755_s12 = int_to_ptr.vmem [resolvable:$false] %s1754_s12 }
 0x303   : > { %s1756_s5 = scalar_lea.vmem %s1755_s12, 256  ;;  %p1757_p12 = scmp.lt.s32.totalorder %s2164_s21, %s1755_s12 }
 0x304   : > { %p1752_p9 = pnand %p1751_p8, %p2242_p7  ;;  %p1758_p11 = scmp.lt.s32.totalorder %s1756_s5, %s1750_s7 }
 0x306   : > { %p1753_p10 = pneg %p1752_p9  ;;  %p1759_p5 = por %p1758_p11, %p1757_p12 }
 0x308   : > { %p1760_p4 = pnand %p1759_p5, %p1753_p10 }
 0x3c4   : > { %v1228_v39 = vpop.f32.mrb[0].mxu1 }
 0x3c5   : > { %1232 = vst.msk [vmem:[%s306_s24] sm:$0xff] %vm317_vm1, %v1228_v39  ;;  %v1528_v40 = vpop.f32.mrb[1].mxu1 }
 0x3c6   : > { %1763 = shalt.err (!%p1760_p4)
}
 0x3c7   : > { %s1764_s25 = scalar_lea.hbm %s2162_s14, 128  ;;  %s1768_s26 = scalar_lea.hbm %s2214_s3, 1024 }
 0x3c8   : > { %p1765_p6 = scmp.ne.s32.totalorder %s2162_s14, %s1764_s25  ;;  %p1769_p3 = scmp.lt.u32.totalorder %s2162_s14, %s2214_s3 }
 0x3c9   : > { %p1770_p0 = scmp.lt.u32.totalorder %s1768_s26, %s1764_s25  ;;  %p1772_p8 = scmp.lt.u32.totalorder %s1764_s25, %s2162_s14 }
 0x3ca   : > { %p1766_p2 = pnand %p1765_p6, %p2242_p7 }
 0x3cb   : > { %p1771_p1 = por %p1770_p0, %p1769_p3 }
 0x3cc   : > { %p1767_p13 = pneg %p1766_p2 }
 0x3cd   : > { %p1773_p9 = por %p1772_p8, %p1771_p1 }
 0x3cf   : > { %p1774_p10 = pnand %p1773_p9, %p1767_p13 }
 0x3d1   : > { %1777 = shalt.err (!%p1774_p10)
}
 0x3d2   : > { %1555 = dma.vmem_to_hbm [thread:$0]  (%p2242_p7), %s2164_s21, 128, %s2162_s14, %s1234_s1  }
 0x3d3 PF: > { %s2243_s9 = sld [smem:[#allocation18_spill]]  ;;  %p1577_p12 = scmp.ge.s32.totalorder %s1840_s20, 2 }
 0x3d4   : > { %s1279_s10 = sand.u32 1, %s1820_s15  }
 0x3d5   : > { %s1280_s30 = scalar_lea.sflag [#allocation4], %s1279_s10 }
 0x3d9   : > { %p2244_p11 = scmp.ne.s32.totalorder %s2243_s9, 0 }
 0x3db   : > { %p1570_p5 = pnand %p1577_p12, %p2244_p11 }
 0x3dd   : > { %1811 = dma.done.wait (!%p1570_p5), %s1280_s30, 128  }
 0x3de   : > { %1813 = vsyncadd (!%p1570_p5), %s1280_s30, 4294967168  ;;  %s1289_s19 = scalar_lea.sflag [#allocation10], %s1279_s10 }
 0x3df   : > { %1815 = dma.done.wait (!%p1570_p5), %s1289_s19, 128  }
 0x3e0   : > { %1817 = vsyncadd (!%p1570_p5), %s1289_s19, 4294967168  ;;  %s27_s20 = sadd.s32 1, %s1840_s20   ;;  %s2245_s28 = sld [smem:[#allocation17_spill]] }
 0x3e1   : > { %p24_p4 = scmp.ge.s32.totalorder %s27_s20, 10   ;;  %s2246_s18 = sld [smem:[#allocation15_spill]] }
 0x3e2   : > { %s2247_s19 = sld [smem:[#allocation16_spill]]  ;;  %s2248_s15 = smov %s1824_s16 }
 0x3e3   : > { %s2249_s16 = smov %s1828_s17  ;;  %26 = sbr.rel (!%p24_p4) target bundleno = 12 (0xc), region = 118 }
 0x3e6   : > { %s2250_s17 = smov %s2245_s28 }
 0x3ea   :  { %1294 = vsyncpa [#allocation3], 1 }
 0x3eb   :  { %1296 = vsyncpa [#allocation3 + $0x1], 1 }
 0x3ec   :  { %1297 = vsyncpa [#allocation6], 1 }
 0x3ed   :  { %1299 = vsyncpa [#allocation6 + $0x1], 1 }
 0x3ee   :  { %1300 = vsyncpa [#allocation4], 1 }
 0x3ef   :  { %1302 = vsyncpa [#allocation4 + $0x1], 1 }
 0x3f0   :  { %1303 = vsyncpa [#allocation10], 1 }
 0x3f1   :  { %1305 = vsyncpa [#allocation10 + $0x1], 1 }

</bundles_post_ra>
